<compile_context>
chip_gen: v6e
topology: v6e:2x2x1
jax: 0.10.0
libtpu: 0.0.40
codegen_flags: <defaults>
</compile_context>

<pallas_src>
import functools
import math

import jax
import jax.numpy as jnp
from jax.experimental import pallas as pl
from jax.experimental.pallas import tpu as pltpu

SIGMA_MIN = 1e-6   # cfm_params['sigma_min']
_LANES = 128
_SUBLANES = 8


# -----------------------------------------------------------------------------
# Kernel
# -----------------------------------------------------------------------------
def _fused_cfm_kernel(
    data_ref,      # (Rb, 3F+2) f32   [x1 | mu | z | mask | t]
    se_ref,        # (Rb, Dse)  bf16  [spk | emo]
    tproj_ref,     # (bc, 1, H) f32   temb@wt + bt + b1, per batch element
    se_w_ref,      # (Dse, 2Fh) bf16  block-diag(spk_w, emo_w)
    se_b_ref,      # (1, 2Fh)   f32
    w1_ref,        # (3, Cin, H) bf16 conv1 weight, (k, c_in, c_out)
    w2_ref,        # (3, H, F)   bf16 conv2 weight
    b2_ref,        # (1, F)      f32
    o_ref,         # (1, 8, 128) f32  per-block partial of sum((est-u)^2)
    *, n_feats, seq_len, bc,
):
    f32 = jnp.float32
    bf16 = jnp.bfloat16
    F = n_feats

    data = data_ref[...]                        # (Rb, 3F+2)
    x1 = data[:, 0:F]
    mu = data[:, F:2 * F]
    z = data[:, 2 * F:3 * F]
    mask = data[:, 3 * F:3 * F + 1]             # (Rb, 1)
    t = data[:, 3 * F + 1:3 * F + 2]            # (Rb, 1)

    Rb = data.shape[0]
    H = w1_ref.shape[-1]

    # --- conditional flow sample and target vector field (f32, VPU) ---------
    y = (1.0 - (1.0 - SIGMA_MIN) * t) * z + t * x1
    u = x1 - (1.0 - SIGMA_MIN) * z

    # --- fused spk_fc / emo_fc: single block-diagonal matmul (bf16 MXU) -----
    se_h = (jnp.dot(se_ref[...], se_w_ref[...], preferred_element_type=f32)
            + se_b_ref[...])                    # (Rb, 2Fh) f32

    # --- boundary masks shared by both convs --------------------------------
    # Zero the conv taps that would wrap across the sequence edge or leak
    # across batch elements folded into this row block.
    tt = jax.lax.broadcasted_iota(jnp.int32, (Rb, 1), 0) % seq_len
    has_prev = tt >= 1
    has_next = tt <= seq_len - 2

    # --- decoder conv1 (k=3, 'same'): three per-tap matmuls -----------------
    # Tap shifts applied to the matmul OUTPUTS (roll commutes with row-wise
    # matmul), so only one copy of the wide input stays live.
    x = jnp.concatenate([y, mu, se_h], axis=-1) * mask      # (Rb, Cin) f32
    xb = x.astype(bf16)
    p_prev = jnp.dot(xb, w1_ref[0], preferred_element_type=f32)
    p_cur = jnp.dot(xb, w1_ref[1], preferred_element_type=f32)
    p_next = jnp.dot(xb, w1_ref[2], preferred_element_type=f32)
    h = (jnp.where(has_prev, pltpu.roll(p_prev, shift=1, axis=0), 0.0)
         + p_cur
         + jnp.where(has_next, pltpu.roll(p_next, shift=Rb - 1, axis=0), 0.0))

    # per-batch time-embedding projection (bt + b1 folded in), expanded over
    # the seq_len frames of each batch element (sublane broadcast + collapse)
    tproj_rows = jnp.broadcast_to(tproj_ref[...], (bc, seq_len, H)).reshape(Rb, H)
    h = h + tproj_rows

    h = h * jax.nn.sigmoid(h)                   # SiLU (f32, EUP)
    h = h * mask

    # --- decoder conv2 (k=3, 'same'), same 3-matmul structure ---------------
    hb = h.astype(bf16)
    q_prev = jnp.dot(hb, w2_ref[0], preferred_element_type=f32)
    q_cur = jnp.dot(hb, w2_ref[1], preferred_element_type=f32)
    q_next = jnp.dot(hb, w2_ref[2], preferred_element_type=f32)
    est = (jnp.where(has_prev, pltpu.roll(q_prev, shift=1, axis=0), 0.0)
           + q_cur
           + jnp.where(has_next, pltpu.roll(q_next, shift=Rb - 1, axis=0), 0.0)
           + b2_ref[...])
    est = est * mask

    # --- partial of F.mse_loss(est, u, reduction='sum') ---------------------
    # NOTE: u is intentionally NOT masked -- matches the reference
    # CFM.compute_loss (only the decoder output is masked).
    d = est - u
    o_ref[...] = jnp.broadcast_to(jnp.sum(d * d), (1, _SUBLANES, _LANES))


# -----------------------------------------------------------------------------
# Grid / block selection (generation-aware)
# -----------------------------------------------------------------------------
def _num_tensorcores():
    """v7x has 2 TensorCores per chip (grid steps shard across them with
    dimension_semantics='parallel'); v5e/v6e have one, where extra grid steps
    are a purely serial loop."""
    try:
        kind = jax.devices()[0].device_kind.lower()
    except Exception:
        return 1
    return 2 if "7" in kind else 1


def _choose_batch_block(B, T_pad, n_cores, target_rows=512):
    """Batch elements per grid step: pick the largest row block (best MXU
    M-fill, fewest serial grid steps) that stays <= ~target_rows, while keeping
    at least `n_cores` grid steps so both v7x TensorCores get work."""
    best = 1
    for cand in range(1, B + 1):
        if B % cand:
            continue
        if cand * T_pad > max(target_rows, T_pad):
            continue
        if B // cand < n_cores and cand != 1:
            continue
        best = cand
    return best


# -----------------------------------------------------------------------------
# Pallas wrapper
# -----------------------------------------------------------------------------
def cfm_fused_loss_pallas(fused, x1, mu, spk, emo, z, mask_bt1, t_b, tproj_b):
    """Fused spk/emo projection + flow sample + decoder + squared-error sum.

    Returns the scalar sum of (est - u)^2 over all frames and channels.
    """
    B, T, F = x1.shape
    Fh = F // 2
    Dse = spk.shape[-1] + emo.shape[-1]
    H = tproj_b.shape[-1]
    Cin = 2 * F + 2 * Fh

    # Pad T to a sublane multiple: padded frames carry zero x1/z/mask so they
    # contribute exactly 0 to the loss sum; also makes every row-block shape
    # legal under the (8,128) rule for any grid split.
    T_pad = -(-T // _SUBLANES) * _SUBLANES
    pad = T_pad - T
    mask_bt1 = mask_bt1.astype(jnp.float32)
    if pad:
        pt = lambda a: jnp.pad(a, ((0, 0), (0, pad), (0, 0)))
        x1, mu, spk, emo, z, mask_bt1 = map(pt, (x1, mu, spk, emo, z, mask_bt1))

    R = B * T_pad
    t_rows = jnp.broadcast_to(t_b.reshape(B, 1, 1).astype(jnp.float32),
                              (B, T_pad, 1))
    # Row-wise slabs: one f32 slab [x1|mu|z|mask|t] and one bf16 slab [spk|emo].
    data = jnp.concatenate(
        [x1, mu, z, mask_bt1, t_rows], axis=-1).reshape(R, 3 * F + 2)
    se = jnp.concatenate(
        [spk, emo], axis=-1).astype(jnp.bfloat16).reshape(R, Dse)
    tproj = tproj_b.reshape(B, 1, H).astype(jnp.float32)   # per-batch, NOT per-row

    n_cores = _num_tensorcores()
    bc = _choose_batch_block(B, T_pad, n_cores)
    G = B // bc
    Rb = bc * T_pad

    rows = lambda c: pl.BlockSpec((Rb, c), lambda i: (i, 0))
    whole = lambda *s: pl.BlockSpec(s, lambda i: (0,) * len(s))

    # NOTE: if profiling at realistic T shows exposed DMA, add
    # pipeline_mode=pl.Buffered(3) to the two row-wise in_specs.
    out = pl.pallas_call(
        functools.partial(_fused_cfm_kernel, n_feats=F, seq_len=T_pad, bc=bc),
        out_shape=jax.ShapeDtypeStruct((G, _SUBLANES, _LANES), jnp.float32),
        grid=(G,),
        in_specs=[
            rows(3 * F + 2),                              # [x1|mu|z|mask|t]
            rows(Dse),                                    # [spk|emo] (bf16)
            pl.BlockSpec((bc, 1, H), lambda i: (i, 0, 0)),  # tproj per batch
            whole(Dse, 2 * Fh),                           # fused spk/emo W (bf16)
            whole(1, 2 * Fh),                             # fused spk/emo bias
            whole(3, Cin, H),                             # conv1 W (bf16)
            whole(3, H, F),                               # conv2 W (bf16)
            whole(1, F),                                  # conv2 bias
        ],
        out_specs=pl.BlockSpec((1, _SUBLANES, _LANES), lambda i: (i, 0, 0)),
        compiler_params=pltpu.CompilerParams(
            dimension_semantics=("parallel",)),
    )(data, se, tproj, fused["se_w"], fused["se_b"], fused["w1"], fused["w2"],
      fused["b2"])
    return jnp.sum(out[:, 0, 0])


# -----------------------------------------------------------------------------
# Glue (plain JAX): parameters, RNG draws, time embedding, final divide.
# -----------------------------------------------------------------------------
def sinusoidal_time_embedding(t, dim, scale=1000.0):
    half = dim // 2
    freqs = jnp.exp(-math.log(10000.0) * jnp.arange(half, dtype=jnp.float32) / half)
    args = scale * t[:, None] * freqs[None, :]
    return jnp.concatenate([jnp.sin(args), jnp.cos(args)], axis=-1)   # (B, dim)


class FlowMatchingModuleJAX:
    """JAX/Pallas counterpart of FlowMatchingModule (training-loss forward)."""

    def __init__(self, spk_emb_dim, emo_emb_dim, conv_emb_dim=None,
                 n_feats=32, decoder_config=None, seed=1):
        assert conv_emb_dim is None, "conv branch disabled, as in forward()"
        decoder_config = decoder_config or {
            "channels": 64, "kernel_size": 3, "time_emb_dim": 32,
        }
        Fh = n_feats // 2
        H = decoder_config["channels"]
        Temb = decoder_config["time_emb_dim"]
        Cin = 2 * n_feats + 2 * Fh       # content/conv emb dims are 0

        self.n_feats = n_feats
        self.time_emb_dim = Temb

        k = jax.random.split(jax.random.PRNGKey(seed), 6)
        s = 0.05
        f32 = jnp.float32
        spk_w = s * jax.random.normal(k[0], (spk_emb_dim, Fh), f32)
        emo_w = s * jax.random.normal(k[1], (emo_emb_dim, Fh), f32)
        spk_b = jnp.zeros((1, Fh), f32)
        emo_b = jnp.zeros((1, Fh), f32)
        # conv weights: (K, C_in, C_out) == torch conv1d weight.permute(2,1,0)
        w1 = s * jax.random.normal(k[2], (3, Cin, H), f32)
        b1 = jnp.zeros((1, H), f32)
        wt = s * jax.random.normal(k[3], (Temb, H), f32)
        bt = jnp.zeros((1, H), f32)
        w2 = s * jax.random.normal(k[4], (3, H, n_feats), f32)
        b2 = jnp.zeros((1, n_feats), f32)

        # Precompute MXU-facing fused / bf16 parameters once:
        #  - spk_fc/emo_fc as one block-diagonal matmul,
        #  - bf16 weights (f32 accumulation happens in the kernel),
        #  - b1 and bt folded into the per-batch time projection.
        se_w = jnp.zeros((spk_emb_dim + emo_emb_dim, 2 * Fh), f32)
        se_w = se_w.at[:spk_emb_dim, :Fh].set(spk_w)
        se_w = se_w.at[spk_emb_dim:, Fh:].set(emo_w)
        self.fused = {
            "se_w": se_w.astype(jnp.bfloat16),
            "se_b": jnp.concatenate([spk_b, emo_b], axis=-1),   # (1, 2Fh) f32
            "w1": w1.astype(jnp.bfloat16),
            "w2": w2.astype(jnp.bfloat16),
            "b2": b2,
            "wt": wt,
            "bt_b1": bt + b1,                                   # folded (1, H)
        }

    def forward(self, coarse_est, spk, emo, conv_out, tgt_fbank, x_mask,
                feat_len, rng):
        del conv_out, feat_len       # conv branch unused; feat_len unused here
        fu = self.fused
        B, T, F = tgt_fbank.shape

        # CFM.compute_loss randomness (torch.rand / torch.randn analogues)
        k_t, k_z = jax.random.split(rng)
        t = jax.random.uniform(k_t, (B,), jnp.float32)
        z = jax.random.normal(k_z, (B, T, F), jnp.float32)

        # sinusoidal time embedding + projection, per batch element (B is tiny)
        temb = sinusoidal_time_embedding(t, self.time_emb_dim)   # (B, Temb)
        tproj = temb @ fu["wt"] + fu["bt_b1"]                    # (B, H)

        mask_bt1 = jnp.transpose(x_mask, (0, 2, 1))              # (B, T, 1)

        sq_sum = cfm_fused_loss_pallas(fu, tgt_fbank, coarse_est, spk, emo,
                                       z, mask_bt1, t, tproj)
        # loss = mse_loss(est, u, 'sum') / (sum(mask) * n_feats)
        return sq_sum / (jnp.sum(x_mask) * F)


if __name__ == "__main__":
    B, T = 2, 16
    n_feats = 32
    spk_emb_dim, emo_emb_dim = 24, 24

    module = FlowMatchingModuleJAX(spk_emb_dim, emo_emb_dim, n_feats=n_feats)

    key = jax.random.PRNGKey(0)
    keys = jax.random.split(key, 6)
    coarse_est = jax.random.normal(keys[0], (B, T, n_feats), jnp.float32)
    spk = jax.random.normal(keys[1], (B, T, spk_emb_dim), jnp.float32)
    emo = jax.random.normal(keys[2], (B, T, emo_emb_dim), jnp.float32)
    tgt_fbank = jax.random.normal(keys[3], (B, T, n_feats), jnp.float32)

    feat_len = jnp.array([T, T - 4], jnp.int32)
    x_mask = (jnp.arange(T)[None, None, :] < feat_len[:, None, None]).astype(
        jnp.float32
    )  # (B, 1, T), same convention as the PyTorch module

    loss = module.forward(coarse_est, spk, emo, None, tgt_fbank, x_mask,
                          feat_len, rng=keys[4])
    loss = jax.block_until_ready(loss)
    assert loss.shape == () and bool(jnp.isfinite(loss))
    print("KERNEL_OK")
</pallas_src>

<mosaic_0001>
module attributes {stable_mosaic.version = 11 : i64} {
  func.func @_fused_cfm_kernel(%arg0: i32, %arg1: memref<32x98xf32, #tpu.memory_space<vmem>>, %arg2: memref<32x48xbf16, #tpu.memory_space<vmem>>, %arg3: memref<2x1x64xf32, #tpu.memory_space<vmem>>, %arg4: memref<48x32xbf16, #tpu.memory_space<vmem>>, %arg5: memref<1x32xf32, #tpu.memory_space<vmem>>, %arg6: memref<3x96x64xbf16, #tpu.memory_space<vmem>>, %arg7: memref<3x64x32xbf16, #tpu.memory_space<vmem>>, %arg8: memref<1x32xf32, #tpu.memory_space<vmem>>, %arg9: memref<1x8x128xf32, #tpu.memory_space<vmem>>) attributes {dimension_semantics = [#tpu.dimension_semantics<parallel>], iteration_bounds = array<i64: 1>, scalar_prefetch = 0 : i64, scratch_operands = 0 : i64, tpu.core_type = #tpu.core_type<tc>, window_params = [{transform_indices = @transform_0, window_bounds = array<i64: 32, 98>}, {transform_indices = @transform_1, window_bounds = array<i64: 32, 48>}, {transform_indices = @transform_2, window_bounds = array<i64: 2, 1, 64>}, {pipeline_mode = #tpu.pipeline_mode<synchronous>, transform_indices = @transform_3, window_bounds = array<i64: 48, 32>}, {pipeline_mode = #tpu.pipeline_mode<synchronous>, transform_indices = @transform_4, window_bounds = array<i64: 1, 32>}, {pipeline_mode = #tpu.pipeline_mode<synchronous>, transform_indices = @transform_5, window_bounds = array<i64: 3, 96, 64>}, {pipeline_mode = #tpu.pipeline_mode<synchronous>, transform_indices = @transform_6, window_bounds = array<i64: 3, 64, 32>}, {pipeline_mode = #tpu.pipeline_mode<synchronous>, transform_indices = @transform_7, window_bounds = array<i64: 1, 32>}, {transform_indices = @transform_8, window_bounds = array<i64: 1, 8, 128>}]} {
    %c0 = arith.constant 0 : index
    %c0_0 = arith.constant 0 : index
    %0 = vector.load %arg1[%c0, %c0_0] : memref<32x98xf32, #tpu.memory_space<vmem>>, vector<32x98xf32>
    %1 = vector.extract_strided_slice %0 {offsets = [0, 0], sizes = [32, 32], strides = [1, 1]} : vector<32x98xf32> to vector<32x32xf32>
    %2 = vector.extract_strided_slice %0 {offsets = [0, 32], sizes = [32, 32], strides = [1, 1]} : vector<32x98xf32> to vector<32x32xf32>
    %3 = vector.extract_strided_slice %0 {offsets = [0, 64], sizes = [32, 32], strides = [1, 1]} : vector<32x98xf32> to vector<32x32xf32>
    %4 = vector.extract_strided_slice %0 {offsets = [0, 96], sizes = [32, 1], strides = [1, 1]} : vector<32x98xf32> to vector<32x1xf32>
    %5 = vector.extract_strided_slice %0 {offsets = [0, 97], sizes = [32, 1], strides = [1, 1]} : vector<32x98xf32> to vector<32x1xf32>
    %cst = arith.constant 0.999998986 : f32
    %6 = vector.broadcast %cst : f32 to vector<32x1xf32>
    %7 = arith.mulf %6, %5 : vector<32x1xf32>
    %cst_1 = arith.constant 1.000000e+00 : f32
    %8 = vector.broadcast %cst_1 : f32 to vector<32x1xf32>
    %9 = arith.subf %8, %7 : vector<32x1xf32>
    %10 = vector.broadcast %9 : vector<32x1xf32> to vector<32x32xf32>
    %11 = arith.mulf %10, %3 : vector<32x32xf32>
    %12 = vector.broadcast %5 : vector<32x1xf32> to vector<32x32xf32>
    %13 = arith.mulf %12, %1 : vector<32x32xf32>
    %14 = arith.addf %11, %13 : vector<32x32xf32>
    %cst_2 = arith.constant 0.999998986 : f32
    %15 = vector.broadcast %cst_2 : f32 to vector<32x32xf32>
    %16 = arith.mulf %15, %3 : vector<32x32xf32>
    %17 = arith.subf %1, %16 : vector<32x32xf32>
    %c0_3 = arith.constant 0 : index
    %c0_4 = arith.constant 0 : index
    %18 = vector.load %arg2[%c0_3, %c0_4] : memref<32x48xbf16, #tpu.memory_space<vmem>>, vector<32x48xbf16>
    %c0_5 = arith.constant 0 : index
    %c0_6 = arith.constant 0 : index
    %19 = vector.load %arg4[%c0_5, %c0_6] : memref<48x32xbf16, #tpu.memory_space<vmem>>, vector<48x32xbf16>
    %cst_7 = arith.constant dense<0.000000e+00> : vector<32x32xf32>
    %20 = tpu.matmul %18, %19, %cst_7 {dimension_numbers = #tpu.dot_dimension_numbers<[1], [0], [0], [1], [0, 0, 1, 1], [], []>} : vector<32x48xbf16>, vector<48x32xbf16>, vector<32x32xf32> -> vector<32x32xf32>
    %c0_8 = arith.constant 0 : index
    %c0_9 = arith.constant 0 : index
    %21 = vector.load %arg5[%c0_8, %c0_9] : memref<1x32xf32, #tpu.memory_space<vmem>>, vector<1x32xf32>
    %22 = vector.broadcast %21 : vector<1x32xf32> to vector<32x32xf32>
    %23 = arith.addf %20, %22 : vector<32x32xf32>
    %24 = tpu.iota {dimensions = array<i32: 0>} : vector<32x1xi32>
    %c16_i32 = arith.constant 16 : i32
    %c0_i32 = arith.constant 0 : i32
    %25 = arith.cmpi eq, %c16_i32, %c0_i32 : i32
    %c1_i32 = arith.constant 1 : i32
    %26 = arith.select %25, %c1_i32, %c16_i32 : i32
    %27 = vector.broadcast %26 : i32 to vector<32x1xi32>
    %28 = arith.remsi %24, %27 : vector<32x1xi32>
    %c0_i32_10 = arith.constant 0 : i32
    %29 = vector.broadcast %c0_i32_10 : i32 to vector<32x1xi32>
    %30 = arith.cmpi ne, %28, %29 : vector<32x1xi32>
    %c0_i32_11 = arith.constant 0 : i32
    %31 = vector.broadcast %c0_i32_11 : i32 to vector<32x1xi32>
    %32 = arith.cmpi slt, %28, %31 : vector<32x1xi32>
    %c0_i32_12 = arith.constant 0 : i32
    %33 = arith.cmpi slt, %26, %c0_i32_12 : i32
    %34 = vector.broadcast %33 : i1 to vector<32x1xi1>
    %35 = vector.broadcast %34 : vector<32x1xi1> to vector<32x1xi1>
    %36 = arith.xori %32, %35 : vector<32x1xi1>
    %37 = arith.andi %36, %30 : vector<32x1xi1>
    %38 = vector.broadcast %26 : i32 to vector<32x1xi32>
    %39 = arith.addi %28, %38 : vector<32x1xi32>
    %40 = arith.select %37, %39, %28 : vector<32x1xi1>, vector<32x1xi32>
    %c1_i32_13 = arith.constant 1 : i32
    %41 = vector.broadcast %c1_i32_13 : i32 to vector<32x1xi32>
    %42 = arith.cmpi sge, %40, %41 : vector<32x1xi32>
    %c14_i32 = arith.constant 14 : i32
    %43 = vector.broadcast %c14_i32 : i32 to vector<32x1xi32>
    %44 = arith.cmpi sle, %40, %43 : vector<32x1xi32>
    %45 = tpu.concatenate %14, %2, %23 in 1 : vector<32x32xf32>, vector<32x32xf32>, vector<32x32xf32> -> vector<32x96xf32>
    %46 = vector.broadcast %4 : vector<32x1xf32> to vector<32x96xf32>
    %47 = arith.mulf %45, %46 : vector<32x96xf32>
    %48 = arith.truncf %47 : vector<32x96xf32> to vector<32x96xbf16>
    %c0_14 = arith.constant 0 : index
    %c0_15 = arith.constant 0 : index
    %c0_16 = arith.constant 0 : index
    %49 = vector.load %arg6[%c0_14, %c0_15, %c0_16] : memref<3x96x64xbf16, #tpu.memory_space<vmem>>, vector<1x96x64xbf16>
    %50 = vector.shape_cast %49 : vector<1x96x64xbf16> to vector<96x64xbf16>
    %cst_17 = arith.constant dense<0.000000e+00> : vector<32x64xf32>
    %51 = tpu.matmul %48, %50, %cst_17 {dimension_numbers = #tpu.dot_dimension_numbers<[1], [0], [0], [1], [0, 0, 1, 1], [], []>} : vector<32x96xbf16>, vector<96x64xbf16>, vector<32x64xf32> -> vector<32x64xf32>
    %c1 = arith.constant 1 : index
    %c0_18 = arith.constant 0 : index
    %c0_19 = arith.constant 0 : index
    %52 = vector.load %arg6[%c1, %c0_18, %c0_19] : memref<3x96x64xbf16, #tpu.memory_space<vmem>>, vector<1x96x64xbf16>
    %53 = vector.shape_cast %52 : vector<1x96x64xbf16> to vector<96x64xbf16>
    %cst_20 = arith.constant dense<0.000000e+00> : vector<32x64xf32>
    %54 = tpu.matmul %48, %53, %cst_20 {dimension_numbers = #tpu.dot_dimension_numbers<[1], [0], [0], [1], [0, 0, 1, 1], [], []>} : vector<32x96xbf16>, vector<96x64xbf16>, vector<32x64xf32> -> vector<32x64xf32>
    %c2 = arith.constant 2 : index
    %c0_21 = arith.constant 0 : index
    %c0_22 = arith.constant 0 : index
    %55 = vector.load %arg6[%c2, %c0_21, %c0_22] : memref<3x96x64xbf16, #tpu.memory_space<vmem>>, vector<1x96x64xbf16>
    %56 = vector.shape_cast %55 : vector<1x96x64xbf16> to vector<96x64xbf16>
    %cst_23 = arith.constant dense<0.000000e+00> : vector<32x64xf32>
    %57 = tpu.matmul %48, %56, %cst_23 {dimension_numbers = #tpu.dot_dimension_numbers<[1], [0], [0], [1], [0, 0, 1, 1], [], []>} : vector<32x96xbf16>, vector<96x64xbf16>, vector<32x64xf32> -> vector<32x64xf32>
    %c1_i32_24 = arith.constant 1 : i32
    %58 = tpu.dynamic_rotate %51 by %c1_i32_24 dim 0 : vector<32x64xf32>, i32 -> vector<32x64xf32>
    %cst_25 = arith.constant 0.000000e+00 : f32
    %59 = vector.shape_cast %42 : vector<32x1xi1> to vector<32x1xi1>
    %60 = vector.broadcast %59 : vector<32x1xi1> to vector<32x64xi1>
    %61 = vector.broadcast %cst_25 : f32 to vector<32x64xf32>
    %62 = arith.select %60, %58, %61 : vector<32x64xi1>, vector<32x64xf32>
    %63 = arith.addf %62, %54 : vector<32x64xf32>
    %c31_i32 = arith.constant 31 : i32
    %64 = tpu.dynamic_rotate %57 by %c31_i32 dim 0 : vector<32x64xf32>, i32 -> vector<32x64xf32>
    %cst_26 = arith.constant 0.000000e+00 : f32
    %65 = vector.shape_cast %44 : vector<32x1xi1> to vector<32x1xi1>
    %66 = vector.broadcast %65 : vector<32x1xi1> to vector<32x64xi1>
    %67 = vector.broadcast %cst_26 : f32 to vector<32x64xf32>
    %68 = arith.select %66, %64, %67 : vector<32x64xi1>, vector<32x64xf32>
    %69 = arith.addf %63, %68 : vector<32x64xf32>
    %c0_27 = arith.constant 0 : index
    %c0_28 = arith.constant 0 : index
    %c0_29 = arith.constant 0 : index
    %70 = vector.load %arg3[%c0_27, %c0_28, %c0_29] : memref<2x1x64xf32, #tpu.memory_space<vmem>>, vector<2x1x64xf32>
    %71 = vector.shape_cast %70 : vector<2x1x64xf32> to vector<2x1x64xf32>
    %72 = vector.broadcast %71 : vector<2x1x64xf32> to vector<2x16x64xf32>
    %73 = vector.shape_cast %72 : vector<2x16x64xf32> to vector<32x64xf32>
    %74 = arith.addf %69, %73 : vector<32x64xf32>
    %75 = arith.negf %74 : vector<32x64xf32>
    %76 = math.exp %75 : vector<32x64xf32>
    %cst_30 = arith.constant 1.000000e+00 : f32
    %77 = vector.broadcast %cst_30 : f32 to vector<32x64xf32>
    %78 = arith.addf %77, %76 : vector<32x64xf32>
    %79 = arith.divf %77, %78 : vector<32x64xf32>
    %80 = arith.mulf %74, %79 : vector<32x64xf32>
    %81 = vector.broadcast %4 : vector<32x1xf32> to vector<32x64xf32>
    %82 = arith.mulf %80, %81 : vector<32x64xf32>
    %83 = arith.truncf %82 : vector<32x64xf32> to vector<32x64xbf16>
    %c0_31 = arith.constant 0 : index
    %c0_32 = arith.constant 0 : index
    %c0_33 = arith.constant 0 : index
    %84 = vector.load %arg7[%c0_31, %c0_32, %c0_33] : memref<3x64x32xbf16, #tpu.memory_space<vmem>>, vector<1x64x32xbf16>
    %85 = vector.shape_cast %84 : vector<1x64x32xbf16> to vector<64x32xbf16>
    %cst_34 = arith.constant dense<0.000000e+00> : vector<32x32xf32>
    %86 = tpu.matmul %83, %85, %cst_34 {dimension_numbers = #tpu.dot_dimension_numbers<[1], [0], [0], [1], [0, 0, 1, 1], [], []>} : vector<32x64xbf16>, vector<64x32xbf16>, vector<32x32xf32> -> vector<32x32xf32>
    %c1_35 = arith.constant 1 : index
    %c0_36 = arith.constant 0 : index
    %c0_37 = arith.constant 0 : index
    %87 = vector.load %arg7[%c1_35, %c0_36, %c0_37] : memref<3x64x32xbf16, #tpu.memory_space<vmem>>, vector<1x64x32xbf16>
    %88 = vector.shape_cast %87 : vector<1x64x32xbf16> to vector<64x32xbf16>
    %cst_38 = arith.constant dense<0.000000e+00> : vector<32x32xf32>
    %89 = tpu.matmul %83, %88, %cst_38 {dimension_numbers = #tpu.dot_dimension_numbers<[1], [0], [0], [1], [0, 0, 1, 1], [], []>} : vector<32x64xbf16>, vector<64x32xbf16>, vector<32x32xf32> -> vector<32x32xf32>
    %c2_39 = arith.constant 2 : index
    %c0_40 = arith.constant 0 : index
    %c0_41 = arith.constant 0 : index
    %90 = vector.load %arg7[%c2_39, %c0_40, %c0_41] : memref<3x64x32xbf16, #tpu.memory_space<vmem>>, vector<1x64x32xbf16>
    %91 = vector.shape_cast %90 : vector<1x64x32xbf16> to vector<64x32xbf16>
    %cst_42 = arith.constant dense<0.000000e+00> : vector<32x32xf32>
    %92 = tpu.matmul %83, %91, %cst_42 {dimension_numbers = #tpu.dot_dimension_numbers<[1], [0], [0], [1], [0, 0, 1, 1], [], []>} : vector<32x64xbf16>, vector<64x32xbf16>, vector<32x32xf32> -> vector<32x32xf32>
    %c1_i32_43 = arith.constant 1 : i32
    %93 = tpu.dynamic_rotate %86 by %c1_i32_43 dim 0 : vector<32x32xf32>, i32 -> vector<32x32xf32>
    %cst_44 = arith.constant 0.000000e+00 : f32
    %94 = vector.shape_cast %42 : vector<32x1xi1> to vector<32x1xi1>
    %95 = vector.broadcast %94 : vector<32x1xi1> to vector<32x32xi1>
    %96 = vector.broadcast %cst_44 : f32 to vector<32x32xf32>
    %97 = arith.select %95, %93, %96 : vector<32x32xi1>, vector<32x32xf32>
    %98 = arith.addf %97, %89 : vector<32x32xf32>
    %c31_i32_45 = arith.constant 31 : i32
    %99 = tpu.dynamic_rotate %92 by %c31_i32_45 dim 0 : vector<32x32xf32>, i32 -> vector<32x32xf32>
    %cst_46 = arith.constant 0.000000e+00 : f32
    %100 = vector.shape_cast %44 : vector<32x1xi1> to vector<32x1xi1>
    %101 = vector.broadcast %100 : vector<32x1xi1> to vector<32x32xi1>
    %102 = vector.broadcast %cst_46 : f32 to vector<32x32xf32>
    %103 = arith.select %101, %99, %102 : vector<32x32xi1>, vector<32x32xf32>
    %104 = arith.addf %98, %103 : vector<32x32xf32>
    %c0_47 = arith.constant 0 : index
    %c0_48 = arith.constant 0 : index
    %105 = vector.load %arg8[%c0_47, %c0_48] : memref<1x32xf32, #tpu.memory_space<vmem>>, vector<1x32xf32>
    %106 = vector.broadcast %105 : vector<1x32xf32> to vector<32x32xf32>
    %107 = arith.addf %104, %106 : vector<32x32xf32>
    %108 = vector.broadcast %4 : vector<32x1xf32> to vector<32x32xf32>
    %109 = arith.mulf %107, %108 : vector<32x32xf32>
    %110 = arith.subf %109, %17 : vector<32x32xf32>
    %111 = arith.mulf %110, %110 : vector<32x32xf32>
    %112 = vector.shape_cast %111 : vector<32x32xf32> to vector<1x32x32xf32>
    %cst_49 = arith.constant dense<0.000000e+00> : vector<1xf32>
    %113 = vector.multi_reduction <add>, %112, %cst_49 [1, 2] : vector<1x32x32xf32> to vector<1xf32>
    %114 = vector.shape_cast %113 : vector<1xf32> to vector<1x1x1xf32>
    %115 = vector.extract %114[0, 0, 0] : f32 from vector<1x1x1xf32>
    %116 = vector.broadcast %115 : f32 to vector<1x8x128xf32>
    %c0_50 = arith.constant 0 : index
    %c0_51 = arith.constant 0 : index
    %c0_52 = arith.constant 0 : index
    %117 = vector.load %arg9[%c0_50, %c0_51, %c0_52] : memref<1x8x128xf32, #tpu.memory_space<vmem>>, vector<1x8x128xf32>
    tpu.vector_store %arg9[%c0_50, %c0_51, %c0_52], %116 {strides = array<i32>} : memref<1x8x128xf32, #tpu.memory_space<vmem>>, vector<1x8x128xf32>,
    return
  }
  func.func @transform_0(%arg0: i32) -> (i32, i32) {
    %c0_i32 = arith.constant 0 : i32
    %c0_i32_0 = arith.constant 0 : i32
    return %arg0, %c0_i32 : i32, i32
  }
  func.func @transform_1(%arg0: i32) -> (i32, i32) {
    %c0_i32 = arith.constant 0 : i32
    %c0_i32_0 = arith.constant 0 : i32
    return %arg0, %c0_i32 : i32, i32
  }
  func.func @transform_2(%arg0: i32) -> (i32, i32, i32) {
    %c0_i32 = arith.constant 0 : i32
    %c0_i32_0 = arith.constant 0 : i32
    %c0_i32_1 = arith.constant 0 : i32
    return %arg0, %c0_i32, %c0_i32_0 : i32, i32, i32
  }
  func.func @transform_3(%arg0: i32) -> (i32, i32) {
    %c0_i32 = arith.constant 0 : i32
    %c0_i32_0 = arith.constant 0 : i32
    %c0_i32_1 = arith.constant 0 : i32
    return %c0_i32, %c0_i32_0 : i32, i32
  }
  func.func @transform_4(%arg0: i32) -> (i32, i32) {
    %c0_i32 = arith.constant 0 : i32
    %c0_i32_0 = arith.constant 0 : i32
    %c0_i32_1 = arith.constant 0 : i32
    return %c0_i32, %c0_i32_0 : i32, i32
  }
  func.func @transform_5(%arg0: i32) -> (i32, i32, i32) {
    %c0_i32 = arith.constant 0 : i32
    %c0_i32_0 = arith.constant 0 : i32
    %c0_i32_1 = arith.constant 0 : i32
    %c0_i32_2 = arith.constant 0 : i32
    return %c0_i32, %c0_i32_0, %c0_i32_1 : i32, i32, i32
  }
  func.func @transform_6(%arg0: i32) -> (i32, i32, i32) {
    %c0_i32 = arith.constant 0 : i32
    %c0_i32_0 = arith.constant 0 : i32
    %c0_i32_1 = arith.constant 0 : i32
    %c0_i32_2 = arith.constant 0 : i32
    return %c0_i32, %c0_i32_0, %c0_i32_1 : i32, i32, i32
  }
  func.func @transform_7(%arg0: i32) -> (i32, i32) {
    %c0_i32 = arith.constant 0 : i32
    %c0_i32_0 = arith.constant 0 : i32
    %c0_i32_1 = arith.constant 0 : i32
    return %c0_i32, %c0_i32_0 : i32, i32
  }
  func.func @transform_8(%arg0: i32) -> (i32, i32, i32) {
    %c0_i32 = arith.constant 0 : i32
    %c0_i32_0 = arith.constant 0 : i32
    %c0_i32_1 = arith.constant 0 : i32
    return %arg0, %c0_i32, %c0_i32_0 : i32, i32, i32
  }
}

</mosaic_0001>

<bundles_post_ra>
// kernel: tpu_custom_call.1
= control target key start
LH: loop header
LB: loop body
LE: loop exit
PB: predicated region body
PF: predicated region fallthrough
CT: control target
= control target key end

     0   :  { %v1418_v2 = vmov 97   ;;  %vm176_vm0 = vcmask 392192   ;;  %v1419_v18 = vmov 96   ;;  %s1789_s0 = inlined_call_operand.vmem [shape: f32[32,98], index: 0, kind: input, shape index: {}]   ;;  %s1790_s1 = inlined_call_operand.vmem [shape: bf16[32,48], index: 1, kind: input, shape index: {}]   ;;  %s1791_s2 = inlined_call_operand.vmem [shape: f32[2,1,64], index: 2, kind: input, shape index: {}]   ;;  %s1792_s3 = inlined_call_operand.vmem [shape: bf16[48,32], index: 3, kind: input, shape index: {}]   ;;  %s1793_s4 = inlined_call_operand.vmem [shape: f32[1,32], index: 4, kind: input, shape index: {}]   ;;  %s1794_s5 = inlined_call_operand.vmem [shape: bf16[3,96,64], index: 5, kind: input, shape index: {}]   ;;  %s1795_s6 = inlined_call_operand.vmem [shape: bf16[3,64,32], index: 6, kind: input, shape index: {}]   ;;  %s1796_s7 = inlined_call_operand.vmem [shape: f32[1,32], index: 7, kind: input, shape index: {}]   ;;  %s1797_s8 = inlined_call_operand.hbm [shape: f32[1,8,128], index: 8, kind: output, shape index: {}]  }
   0x1   :  { %v1470_v0 = vld [vmem:[%s1789_s0 + $0x10] sm:$0xff]  ;;  %v1475_v1 = vld [vmem:[%s1789_s0] sm:$0xff]  ;;  %1342 = vset.pattern.permute.xlu1 %v1418_v2  ;;  %1341 = vset.pattern.permute.xlu0 %v1418_v2  ;;  %v1480_v3 = vld [vmem:[%s1789_s0 + $0x18] sm:$0xff] }
   0x2   :  { %v1485_v4 = vld [vmem:[%s1789_s0 + $0x8] sm:$0xff]  ;;  %v1488_v5 = vmul.f32 0.999999, %v1475_v1  ;;  %v1345_v6 = vld [vmem:[%s1792_s3 + $0x10] sm:$0xff]   ;;  %79 = vperm.xlu1 %1342, %v1470_v0   ;;  %69 = vperm.xlu0 %1341, %v1475_v1   ;;  %v1499_v8 = vmul.f32 0.999999, %v1480_v3 }
   0x3   :  { %v1496_v7 = vmul.f32 0.999999, %v1485_v4  ;;  %v1502_v9 = vmul.f32 0.999999, %v1470_v0  ;;  %1241 = vmatprep.subr.bf16.mxu0 %v1345_v6  ;;  %v1346_v11 = vld [vmem:[%s1792_s3 + $0x8] sm:$0xff]   ;;  %v1347_v12 = vld [vmem:[%s1792_s3] sm:$0xff]  }
   0x4   :  { %v39_v10 = vsub.f32 1.0, %v1488_v5  ;;  %1242 = vmatpush3.bf16.msra.mxu0 %v1345_v6  ;;  %v1348_v14 = vld [vmem:[%s1790_s1] sm:$0xff]   ;;  %v42_v15 = vsub.f32 1.0, %v1499_v8  ;;  %v1349_v17 = vld [vmem:[%s1790_s1 + $0x8] sm:$0xff]  }
   0x5   :  { %v40_v13 = vsub.f32 1.0, %v1496_v7  ;;  %v41_v16 = vsub.f32 1.0, %v1502_v9  ;;  %1243 = vmatprep.subr.bf16.mxu0 %v1346_v11  ;;  %1247 = vmatprep.mubr.msk.bf16.mxu0 %vm176_vm0, %v1348_v14 }
   0x6   :  { %84 = vperm.xlu1 %1342, %v1480_v3   ;;  %74 = vperm.xlu0 %1341, %v1485_v4  }
   0x8   :  { %1244 = vmatpush3.bf16.msra.mxu0 %v1346_v11 }
   0x9   :  { %1245 = vmatprep.subr.bf16.mxu0 %v1347_v12 }
   0xa   :  { %50 = vperm.xlu1 %1342, %v40_v13   ;;  %45 = vperm.xlu0 %1341, %v39_v10  }
   0xc   :  { %1246 = vmatpush3.bf16.msra.mxu0 %v1347_v12 }
   0xe   :  { %60 = vperm.xlu1 %1342, %v42_v15   ;;  %55 = vperm.xlu0 %1341, %v41_v16  }
   0xf   :  { %1248 = vmatmul.mubr.msk.bf16.vlgmr.msra.gmra.mxu0 %vm176_vm0, %v1349_v17 }
  0x12   :  { %1344 = vset.pattern.permute.xlu1 %v1419_v18  ;;  %1343 = vset.pattern.permute.xlu0 %v1419_v18 }
  0x13   :  { %13 = vsyncpa [#allocation3], 0  ;;  %s1420_s21 = smov 64   ;;  %v1350_v27 = vld [vmem:[%s1794_s5 + $0x28] sm:$0xff]   ;;  %v1351_v28 = vld [vmem:[%s1794_s5 + $0x58] sm:$0xff]   ;;  %vm325_vm1 = vcmask 261120  }
  0x14   :  { %1251 = vmatprep.subr.bf16.mxu1 %v1350_v27  ;;  %1267 = vmatprep.subr.bf16.mxu0 %v1351_v28  ;;  %v1352_v29 = vld [vmem:[%s1794_s5 + $0x20] sm:$0xff]   ;;  %v1353_v30 = vld [vmem:[%s1794_s5 + $0x50] sm:$0xff]   ;;  %v1354_v38 = vld [vmem:[%s1794_s5 + $0x18] sm:$0xff]   ;;  %vm330_vm2 = vcmask 523264   ;;  %vm405_vm3 = vcmask 785408  }
  0x15   :  { %1252 = vmatpush3.bf16.msra.mxu1 %v1350_v27  ;;  %1268 = vmatpush3.bf16.msra.mxu0 %v1351_v28  ;;  %v1097_v32 = vld [vmem:[%s1793_s4] ss:$0 sm:$0xff]  ;;  %v1355_v39 = vld [vmem:[%s1794_s5 + $0x48] sm:$0xff]   ;;  %v1356_v41 = vld [vmem:[%s1794_s5 + $0x10] sm:$0xff]  }
  0x16   :  { %1253 = vmatprep.subr.bf16.mxu1 %v1352_v29  ;;  %1269 = vmatprep.subr.bf16.mxu0 %v1353_v30  ;;  %v1357_v42 = vld [vmem:[%s1794_s5 + $0x40] sm:$0xff]   ;;  %v1358_v45 = vld [vmem:[%s1794_s5 + $0x8] sm:$0xff]   ;;  %v1359_v46 = vld [vmem:[%s1794_s5 + $0x38] sm:$0xff]  }
  0x17   :  { %v1360_v50 = vld [vmem:[%s1794_s5] sm:$0xff]   ;;  %v1361_v52 = vld [vmem:[%s1794_s5 + $0x30] sm:$0xff]   ;;  %v1362_v57 = vld [vmem:[%s1794_s5 + $0x88] sm:$0xff]  }
  0x19   :  { %1254 = vmatpush3.bf16.msra.mxu1 %v1352_v29  ;;  %1270 = vmatpush3.bf16.msra.mxu0 %v1353_v30 }
  0x1a   :  { %1255 = vmatprep.subr.bf16.mxu1 %v1354_v38  ;;  %1271 = vmatprep.subr.bf16.mxu0 %v1355_v39 }
  0x1d   :  { %1256 = vmatpush3.bf16.msra.mxu1 %v1354_v38  ;;  %1272 = vmatpush3.bf16.msra.mxu0 %v1355_v39  ;;  %v1370_v38 = vld [vmem:[%s1795_s6 + $0x10] sm:$0xff]  }
  0x1e   :  { %1257 = vmatprep.subr.bf16.mxu1 %v1356_v41  ;;  %1273 = vmatprep.subr.bf16.mxu0 %v1357_v42  ;;  %v1371_v39 = vld [vmem:[%s1795_s6 + $0x30] sm:$0xff]  }
  0x21   :  { %1258 = vmatpush3.bf16.msra.mxu1 %v1356_v41  ;;  %1274 = vmatpush3.bf16.msra.mxu0 %v1357_v42  ;;  %v1373_v41 = vld [vmem:[%s1795_s6 + $0x28] sm:$0xff]   ;;  %v1374_v42 = vld [vmem:[%s1795_s6] sm:$0xff]  }
  0x22   :  { %1259 = vmatprep.subr.bf16.mxu1 %v1358_v45  ;;  %1275 = vmatprep.subr.bf16.mxu0 %v1359_v46 }
  0x25   :  { %1260 = vmatpush3.bf16.msra.mxu1 %v1358_v45  ;;  %1276 = vmatpush3.bf16.msra.mxu0 %v1359_v46  ;;  %v232_v46 = vlaneseq }
  0x26   :  { %1261 = vmatprep.subr.bf16.mxu1 %v1360_v50  ;;  %1277 = vmatprep.subr.bf16.mxu0 %v1361_v52 }
  0x29   :  { %1262 = vmatpush3.bf16.msra.mxu1 %v1360_v50  ;;  %1278 = vmatpush3.bf16.msra.mxu0 %v1361_v52 }
  0x2a   :  { %1283 = vmatprep.subr.bf16.mxu1 %v1362_v57 }
  0x7d   :  { %v80_v19 = vpop.permute.xlu1 %79  ;;  %v70_v20 = vpop.permute.xlu0 %69 }
  0x7e   :  { %v87_v21 = vmul.f32 %v70_v20, %v1475_v1  ;;  %v89_v22 = vmul.f32 %v80_v19, %v1470_v0 }
  0x80   :  { %95 = vrot.lane.b32.xlu0 %v87_v21, %s1420_s21 }
  0x81   :  { %v75_v23 = vpop.permute.xlu0 %74  ;;  %v85_v25 = vpop.permute.xlu1 %84 }
  0x82   :  { %v88_v24 = vmul.f32 %v75_v23, %v1485_v4  ;;  %v90_v26 = vmul.f32 %v85_v25, %v1480_v3 }
  0x84   :  { %97 = vrot.lane.b32.xlu1 %v88_v24, %s1420_s21  ;;  %99 = vrot.lane.b32.xlu0 %v89_v22, %s1420_s21 }
  0x85   :  { %v46_v40 = vpop.permute.xlu0 %45  ;;  %v51_v43 = vpop.permute.xlu1 %50 }
  0x86   :  { %v63_v47 = vmul.f32 %v46_v40, %v1475_v1  ;;  %v64_v53 = vmul.f32 %v51_v43, %v1485_v4  ;;  %v1372_v40 = vld [vmem:[%s1795_s6 + $0x8] sm:$0xff]   ;;  %v1375_v43 = vld [vmem:[%s1795_s6 + $0x20] sm:$0xff]  }
  0x88   :  { %101 = vrot.lane.b32.xlu1 %v90_v26, %s1420_s21  ;;  %336 = vperm.xlu0 %1343, %v1475_v1  }
  0x89   :  { %v56_v44 = vpop.permute.xlu0 %55  ;;  %v61_v48 = vpop.permute.xlu1 %60 }
  0x8a   :  { %v65_v54 = vmul.f32 %v56_v44, %v1470_v0  ;;  %v66_v60 = vmul.f32 %v61_v48, %v1480_v3  ;;  %v1670_v44 = vld [vmem:[%s1795_s6 + $0x58] sm:$0xff]   ;;  %v1673_v48 = vshrl.u32 %v232_v46, 7 }
  0x8c   :  { %340 = vperm.xlu1 %1344, %v1485_v4   ;;  %348 = vperm.xlu0 %1343, %v1480_v3   ;;  %v235_v50 = vadd.s32 16, %v1673_v48  ;;  %vm661_vm4 = vcmp.lt.s32.totalorder %v1673_v48, 1  ;;  %vm686_vm8 = vcmp.lt.s32.totalorder %v1673_v48, 7 }
  0x90   :  { %344 = vperm.xlu1 %1344, %v1470_v0  }
  0xcf   :  { %v1249_v31 = vpop.f32.mrf.mxu0 }
  0xd0   :  { %v226_v62 = vadd.f32 %v1249_v31, %v1097_v32  ;;  %v1363_v31 = vld [vmem:[%s1794_s5 + $0x80] sm:$0xff]  }
  0xd1   :  { %v217_v33 = vpop.f32.mrf.mxu0 }
  0xd2   :  { %v218_v34 = vadd.f32 %v1097_v32, %v217_v33  ;;  %v1365_v33 = vld [vmem:[%s1794_s5 + $0x70] sm:$0xff]  }
  0xd3   :  { %v1250_v35 = vpop.f32.mrf.mxu0 }
  0xd4   :  { %313 = vrot.lane.b32.xlu1 %v218_v34, %s1420_s21  ;;  %v229_v2 = vadd.f32 %v1250_v35, %v1097_v32  ;;  %v1366_v34 = vld [vmem:[%s1794_s5 + $0x68] sm:$0xff]   ;;  %v1367_v35 = vld [vmem:[%s1794_s5 + $0x60] sm:$0xff]  }
  0xd5   :  { %v220_v36 = vpop.f32.mrf.mxu0 }
  0xd6   :  { %v221_v37 = vadd.f32 %v1097_v32, %v220_v36  ;;  %v1364_v32 = vld [vmem:[%s1794_s5 + $0x78] sm:$0xff]  }
  0xd7   :  { %v1368_v36 = vld [vmem:[%s1795_s6 + $0x18] sm:$0xff]  }
  0xd8   :  { %315 = vrot.lane.b32.xlu0 %v221_v37, %s1420_s21  ;;  %v1369_v37 = vld [vmem:[%s1795_s6 + $0x38] sm:$0xff]   ;;  %1299 = vmatprep.subr.bf16.mxu0 %v1368_v36 }
  0xf2   :  { %v96_v49 = vpop.permute.xlu0 %95 }
  0xf3   :  { %v107_v51 = vadd.f32 %v96_v49, %v63_v47 }
  0xf5   :  { %297 = vrot.lane.b32.xlu1 %v107_v51, %s1420_s21 }
  0xf6   :  { %v98_v55 = vpop.permute.xlu1 %97  ;;  %v100_v56 = vpop.permute.xlu0 %99 }
  0xf7   :  { %v108_v58 = vadd.f32 %v98_v55, %v64_v53  ;;  %v109_v59 = vadd.f32 %v100_v56, %v65_v54  ;;  %v255_v53 = vand.u32 15, %v235_v50  ;;  %v236_v55 = vadd.s32 24, %v1673_v48 }
  0xf9   :  { %299 = vrot.lane.b32.xlu0 %v108_v58, %s1420_s21  ;;  %301 = vrot.lane.b32.xlu1 %v109_v59, %s1420_s21  ;;  %v234_v59 = vadd.s32 8, %v1673_v48  ;;  %vm1680_vm5 = vcmp.ge.s32.totalorder %v255_v53, 1 }
  0xfa   :  { %v102_v61 = vpop.permute.xlu1 %101 }
  0xfb   :  { %v110_v63 = vadd.f32 %v102_v61, %v66_v60 }
  0xfd   :  { %303 = vrot.lane.b32.xlu0 %v110_v63, %s1420_s21  ;;  %317 = vrot.lane.b32.xlu1 %v226_v62, %s1420_s21 }
 0x101   :  { %319 = vrot.lane.b32.xlu0 %v229_v2, %s1420_s21  ;;  %115 = vrot.lane.b32.xlu1 %v1488_v5, %s1420_s21 }
 0x103   :  { %v1600_v10 = vpop.permute.xlu0 %336 }
 0x105   :  { %117 = vrot.lane.b32.xlu0 %v1496_v7, %s1420_s21  ;;  %119 = vrot.lane.b32.xlu1 %v1502_v9, %s1420_s21 }
 0x107   :  { %v1598_v6 = vpop.permute.xlu1 %340  ;;  %v1604_v12 = vpop.permute.xlu0 %348 }
 0x109   :  { %121 = vrot.lane.b32.xlu0 %v1499_v8, %s1420_s21 }
 0x10b   :  { %v1602_v11 = vpop.permute.xlu1 %344 }
 0x146   :  { %v314_v13 = vpop.permute.xlu1 %313 }
 0x14a   :  { %v316_v5 = vpop.permute.xlu0 %315 }
 0x167   :  { %v298_v14 = vpop.permute.xlu1 %297 }
 0x168   :  { %v326_v7 = vsel %vm325_vm1, %v298_v14, %v1475_v1 }
 0x169   :  { %v331_v9 = vsel %vm330_vm2, %v326_v7, %v314_v13  ;;  %v262_v13 = vand.u32 15, %v236_v55 }
 0x16a   :  { %v351_v18 = vmul.f32 %v1600_v10, %v331_v9  ;;  %v248_v9 = vand.u32 15, %v234_v59 }
 0x16b   :  { %v302_v15 = vpop.permute.xlu1 %301  ;;  %v300_v8 = vpop.permute.xlu0 %299  ;;  %vm1696_vm7 = vcmp.le.s32.totalorder %v262_v13, 14 }
 0x16c   :  { %v327_v16 = vsel %vm325_vm1, %v300_v8, %v1485_v4  ;;  %v328_v23 = vsel %vm325_vm1, %v302_v15, %v1470_v0  ;;  %vm1705_vm9 = vcmp.le.s32.totalorder %v248_v9, 14 }
 0x16d   :  { %v332_v17 = vsel %vm330_vm2, %v327_v16, %v316_v5  ;;  %v1193_v5 = vld [vmem:[%s1796_s7] ss:$0 sm:$0xff]  ;;  %s1421_s7 = smov [#allocation2]  }
 0x16e   :  { %v352_v19 = vmul.f32 %v1598_v6, %v332_v17  ;;  %s1089_s12 = sshll.u32 %s1421_s7, 4  ;;  %s1090_s12 = int_to_ptr.vmem [resolvable:$true] %s1089_s12 }
 0x16f   :  { %v318_v20 = vpop.permute.xlu1 %317  ;;  %v304_v21 = vpop.permute.xlu0 %303  ;;  %s1396_s13 = scalar_lea.vmem %s1090_s12, 128  ;;  %p1401_p1 = scmp.lt.s32.totalorder %s1090_s12, %s1090_s12 }
 0x170   :  { %v355_v22 = vpack.c.bf16 %v352_v19, %v351_v18  ;;  %v333_v24 = vsel %vm330_vm2, %v328_v23, %v318_v20  ;;  %v329_v25 = vsel %vm325_vm1, %v304_v21, %v1480_v3  ;;  %p1397_p0 = scmp.ne.s32.totalorder %s1090_s12, %s1396_s13  ;;  %p1402_p2 = scmp.lt.s32.totalorder %s1396_s13, %s1396_s13 }
 0x171   :  { %v353_v28 = vmul.f32 %v1602_v11, %v333_v24 }
 0x172   :  { %1263 = vmatprep.mubr.msk.bf16.mxu1 %vm405_vm3, %v355_v22  ;;  %1279 = vmatprep.mubr.msk.bf16.mxu0 %vm405_vm3, %v355_v22  ;;  %p1403_p3 = por %p1402_p2, %p1401_p1 }
 0x173   :  { %v320_v26 = vpop.permute.xlu0 %319 }
 0x174   :  { %v334_v27 = vsel %vm330_vm2, %v329_v25, %v320_v26  ;;  %p1404_p4 = pnand %p1403_p3, %p1397_p0 }
 0x175   :  { %v354_v29 = vmul.f32 %v1604_v12, %v334_v27 }
 0x177   :  { %v356_v30 = vpack.c.bf16 %v354_v29, %v353_v28 }
 0x179   :  { %1264 = vmatmul.mubr.msk.bf16.vlgmr.msra.gmra.mxu1 %vm405_vm3, %v356_v30  ;;  %1280 = vmatmul.mubr.msk.bf16.vlgmr.msra.gmra.mxu0 %vm405_vm3, %v356_v30 }
 0x17a   :  { %1284 = vmatpush3.bf16.msra.mxu1 %v1362_v57  ;;  %1295 = vmatprep.mubr.msk.bf16.mxu1 %vm405_vm3, %v355_v22  ;;  %v241_v57 = vand.u32 15, %v1673_v48 }
 0x17b   :  { %1285 = vmatprep.subr.bf16.mxu1 %v1363_v31  ;;  %1300 = vmatpush3.bf16.msra.mxu0 %v1368_v36 }
 0x17c   :  { %1301 = vmatprep.subr.bf16.mxu0 %v1370_v38  ;;  %vm1686_vm6 = vcmp.ge.s32.totalorder %v241_v57, 1 }
 0x17e   :  { %1286 = vmatpush3.bf16.msra.mxu1 %v1363_v31 }
 0x17f   :  { %1287 = vmatprep.subr.bf16.mxu1 %v1364_v32  ;;  %1302 = vmatpush3.bf16.msra.mxu0 %v1370_v38 }
 0x180   :  { %1303 = vmatprep.subr.bf16.mxu0 %v1372_v40 }
 0x182   :  { %1288 = vmatpush3.bf16.msra.mxu1 %v1364_v32 }
 0x183   :  { %1289 = vmatprep.subr.bf16.mxu1 %v1365_v33  ;;  %1304 = vmatpush3.bf16.msra.mxu0 %v1372_v40  ;;  %v1153_v40 = vld [vmem:[%s1791_s2] ss:$0 sm:$0xff] }
 0x184   :  { %1305 = vmatprep.subr.bf16.mxu0 %v1374_v42 }
 0x186   :  { %1290 = vmatpush3.bf16.msra.mxu1 %v1365_v33 }
 0x187   :  { %1291 = vmatprep.subr.bf16.mxu1 %v1366_v34  ;;  %1306 = vmatpush3.bf16.msra.mxu0 %v1374_v42 }
 0x188   :  { %1323 = vmatprep.subr.bf16.mxu0 %v1670_v44 }
 0x18a   :  { %1292 = vmatpush3.bf16.msra.mxu1 %v1366_v34 }
 0x18b   :  { %1293 = vmatprep.subr.bf16.mxu1 %v1367_v35 }
 0x18e   :  { %1294 = vmatpush3.bf16.msra.mxu1 %v1367_v35 }
 0x18f   :  { %1311 = vmatprep.subr.bf16.mxu1 %v1369_v37 }
 0x191   :  { %1296 = vmatmul.mubr.msk.bf16.vlgmr.msra.gmra.mxu1 %vm405_vm3, %v356_v30  ;;  %v1154_v30 = vld [vmem:[%s1791_s2 + $0x1] ss:$0 sm:$0xff] }
 0x192   :  { %1312 = vmatpush3.bf16.msra.mxu1 %v1369_v37 }
 0x193   :  { %1313 = vmatprep.subr.bf16.mxu1 %v1371_v39 }
 0x196   :  { %1314 = vmatpush3.bf16.msra.mxu1 %v1371_v39 }
 0x197   :  { %1315 = vmatprep.subr.bf16.mxu1 %v1373_v41 }
 0x19a   :  { %1316 = vmatpush3.bf16.msra.mxu1 %v1373_v41 }
 0x19b   :  { %1317 = vmatprep.subr.bf16.mxu1 %v1375_v43 }
 0x19e   :  { %1318 = vmatpush3.bf16.msra.mxu1 %v1375_v43 }
 0x239   :  { %v1265_v45 = vpop.f32.mrf.mxu1  ;;  %v1281_v52 = vpop.f32.mrf.mxu0 }
 0x23a   :  { %v659_v56 = vrot.slane %v1265_v45, 7 }
 0x23b   :  { %v446_v47 = vpop.f32.mrf.mxu1  ;;  %v544_v61 = vpop.f32.mrf.mxu0 }
 0x23c   :  { %v657_v60 = vrot.slane %v446_v47, 7 }
 0x23d   :  { %v1266_v49 = vpop.f32.mrf.mxu1  ;;  %v1282_v8 = vpop.f32.mrf.mxu0 }
 0x23e   :  { %v660_v58 = vrot.slane %v1266_v49, 7 }
 0x23f   :  { %v449_v51 = vpop.f32.mrf.mxu1  ;;  %v547_v33 = vpop.f32.mrf.mxu0 }
 0x240   :  { %v658_v54 = vrot.slane %v449_v51, 7  ;;  %v665_v14 = vsel %vm661_vm4, %v660_v58, %v657_v60  ;;  %v662_v16 = vsel %vm661_vm4, %v659_v56, %v660_v58 }
 0x241   :  { %v674_v19 = vsel %vm1686_vm6, %v665_v14, 0.0  ;;  %v681_v27 = vadd.f32 %v1282_v8, %v662_v16 }
 0x242   :  { %v663_v63 = vsel %vm661_vm4, %v658_v54, %v659_v56  ;;  %v664_v24 = vsel %vm661_vm4, %v657_v60, %v658_v54  ;;  %v678_v32 = vadd.f32 %v674_v19, %v544_v61 }
 0x243   :  { %v676_v15 = vsel %vm1680_vm5, %v663_v63, 0.0  ;;  %v679_v36 = vadd.f32 %v664_v24, %v547_v33  ;;  %v1378_v24 = vld [vmem:[%s1795_s6 + $0x48] sm:$0xff]  }
 0x244   :  { %v680_v23 = vadd.f32 %v1281_v52, %v676_v15 }
 0x251   :  { %v1297_v2 = vpop.f32.mrf.mxu1 }
 0x252   :  { %v684_v20 = vrot.slane %v1297_v2, 1 }
 0x253   :  { %v642_v7 = vpop.f32.mrf.mxu1 }
 0x254   :  { %v682_v21 = vrot.slane %v642_v7, 1 }
 0x255   :  { %v1298_v18 = vpop.f32.mrf.mxu1 }
 0x256   :  { %v685_v22 = vrot.slane %v1298_v18, 1 }
 0x257   :  { %v645_v26 = vpop.f32.mrf.mxu1 }
 0x258   :  { %v687_v28 = vsel %vm686_vm8, %v684_v20, %v685_v22  ;;  %v690_v29 = vsel %vm686_vm8, %v685_v22, %v682_v21  ;;  %v683_v31 = vrot.slane %v645_v26, 1  ;;  %v1379_v26 = vld [vmem:[%s1795_s6 + $0x40] sm:$0xff]  }
 0x259   :  { %v702_v34 = vsel %vm1696_vm7, %v690_v29, 0.0  ;;  %v705_v35 = vadd.f32 %v687_v28, %v680_v23  ;;  %v1377_v23 = vld [vmem:[%s1795_s6 + $0x50] sm:$0xff]  }
 0x25a   :  { %v706_v37 = vadd.f32 %v702_v34, %v681_v27  ;;  %v688_v38 = vsel %vm686_vm8, %v683_v31, %v684_v20  ;;  %v689_v39 = vsel %vm686_vm8, %v682_v21, %v683_v31 }
 0x25b   :  { %v723_v41 = vadd.f32 %v1154_v30, %v705_v35  ;;  %v700_v42 = vsel %vm1705_vm9, %v688_v38, 0.0  ;;  %v703_v43 = vadd.f32 %v689_v39, %v678_v32 }
 0x25c   :  { %v724_v45 = vadd.f32 %v1154_v30, %v706_v37  ;;  %v704_v46 = vadd.f32 %v700_v42, %v679_v36  ;;  %v118_v42 = vpop.permute.xlu0 %117 }
 0x25d   :  { %v1157_v47 = vmul.f32 -1.442695, %v723_v41  ;;  %v721_v49 = vadd.f32 %v1153_v40, %v703_v43 }
 0x25e   :  { %v1158_v50 = vmul.f32 -1.442695, %v724_v45  ;;  %v722_v51 = vadd.f32 %v1153_v40, %v704_v46  ;;  %v116_v40 = vpop.permute.xlu1 %115 }
 0x25f   :  { %1380 = vpow2.f32 %v1157_v47  ;;  %v1155_v52 = vmul.f32 -1.442695, %v721_v49 }
 0x260   :  { %1382 = vpow2.f32 %v1158_v50  ;;  %v1156_v53 = vmul.f32 -1.442695, %v722_v51 }
 0x261   :  { %1384 = vpow2.f32 %v1155_v52 }
 0x262   :  { %1386 = vpow2.f32 %v1156_v53 }
 0x26c   :  { %v1381_v54 = vpop.eup %1380 }
 0x26d   :  { %v1383_v55 = vpop.eup %1382  ;;  %v739_v56 = vadd.f32 1.0, %v1381_v54 }
 0x26e   :  { %v1385_v57 = vpop.eup %1384  ;;  %v740_v58 = vadd.f32 1.0, %v1383_v55 }
 0x26f   :  { %v1387_v59 = vpop.eup %1386  ;;  %1388 = vrcp.f32 %v739_v56  ;;  %v737_v60 = vadd.f32 1.0, %v1385_v57 }
 0x270   :  { %1390 = vrcp.f32 %v740_v58  ;;  %v738_v61 = vadd.f32 1.0, %v1387_v59 }
 0x271   :  { %1392 = vrcp.f32 %v737_v60 }
 0x272   :  { %1394 = vrcp.f32 %v738_v61 }
 0x27c   :  { %v1389_v63 = vpop.eup %1388 }
 0x27d   :  { %v1391_v2 = vpop.eup %1390  ;;  %v751_v13 = vmul.f32 %v1389_v63, %v723_v41  ;;  %v120_v63 = vpop.permute.xlu1 %119 }
 0x27e   :  { %v1393_v14 = vpop.eup %1392  ;;  %v752_v7 = vmul.f32 %v1391_v2, %v724_v45  ;;  %v129_v17 = vsub.f32 %v1470_v0, %v120_v63 }
 0x27f   :  { %v1395_v9 = vpop.eup %1394  ;;  %v749_v15 = vmul.f32 %v1393_v14, %v721_v49  ;;  %v755_v16 = vmul.f32 %v751_v13, %v1602_v11 }
 0x280   :  { %v750_v8 = vmul.f32 %v1395_v9, %v722_v51  ;;  %v756_v18 = vmul.f32 %v752_v7, %v1604_v12 }
 0x281   :  { %v753_v19 = vmul.f32 %v749_v15, %v1600_v10 }
 0x282   :  { %v754_v20 = vmul.f32 %v750_v8, %v1598_v6  ;;  %v758_v22 = vpack.c.bf16 %v756_v18, %v755_v16  ;;  %v122_v16 = vpop.permute.xlu0 %121 }
 0x283   :  { %v130_v25 = vsub.f32 %v1480_v3, %v122_v16 }
 0x284   :  { %v757_v21 = vpack.c.bf16 %v754_v20, %v753_v19  ;;  %v127_v20 = vsub.f32 %v1475_v1, %v116_v40 }
 0x286   :  { %1307 = vmatprep.mubr.msk.bf16.mxu0 %vm330_vm2, %v757_v21  ;;  %1319 = vmatprep.mubr.msk.bf16.mxu1 %vm330_vm2, %v757_v21 }
 0x287   :  { %1308 = vmatmul.mubr.msk.bf16.vlgmr.msra.gmra.mxu0 %vm330_vm2, %v758_v22  ;;  %1320 = vmatmul.mubr.msk.bf16.vlgmr.msra.gmra.mxu1 %vm330_vm2, %v758_v22 }
 0x288   :  { %1324 = vmatpush3.bf16.msra.mxu0 %v1670_v44  ;;  %1331 = vmatprep.mubr.msk.bf16.mxu0 %vm330_vm2, %v757_v21 }
 0x289   :  { %1325 = vmatprep.subr.bf16.mxu0 %v1377_v23 }
 0x28c   :  { %1326 = vmatpush3.bf16.msra.mxu0 %v1377_v23 }
 0x28d   :  { %1327 = vmatprep.subr.bf16.mxu0 %v1378_v24 }
 0x290   :  { %1328 = vmatpush3.bf16.msra.mxu0 %v1378_v24  ;;  %v128_v24 = vsub.f32 %v1485_v4, %v118_v42 }
 0x291   :  { %1329 = vmatprep.subr.bf16.mxu0 %v1379_v26 }
 0x294   :  { %1330 = vmatpush3.bf16.msra.mxu0 %v1379_v26 }
 0x297   :  { %1332 = vmatmul.mubr.msk.bf16.vlgmr.msra.gmra.mxu0 %vm330_vm2, %v758_v22 }
 0x347   :  { %v1309_v27 = vpop.f32.mrf.mxu0  ;;  %v1321_v30 = vpop.f32.mrf.mxu1 }
 0x348   :  { %v1012_v32 = vrot.slane %v1309_v27, 7 }
 0x349   :  { %v831_v44 = vpop.f32.mrf.mxu0  ;;  %v913_v35 = vpop.f32.mrf.mxu1 }
 0x34a   :  { %v1010_v34 = vrot.slane %v831_v44, 7 }
 0x34b   :  { %v1310_v28 = vpop.f32.mrf.mxu0  ;;  %v1322_v43 = vpop.f32.mrf.mxu1 }
 0x34c   :  { %v1013_v33 = vrot.slane %v1310_v28, 7 }
 0x34d   :  { %v834_v29 = vpop.f32.mrf.mxu0  ;;  %v916_v59 = vpop.f32.mrf.mxu1 }
 0x34e   :  { %v1011_v31 = vrot.slane %v834_v29, 7  ;;  %v1017_v38 = vsel %vm661_vm4, %v1013_v33, %v1010_v34  ;;  %v1014_v45 = vsel %vm661_vm4, %v1012_v32, %v1013_v33 }
 0x34f   :  { %v1018_v47 = vsel %vm1686_vm6, %v1017_v38, 0.0  ;;  %v1025_v55 = vadd.f32 %v1322_v43, %v1014_v45 }
 0x350   :  { %v1015_v36 = vsel %vm661_vm4, %v1011_v31, %v1012_v32  ;;  %v1016_v53 = vsel %vm661_vm4, %v1010_v34, %v1011_v31  ;;  %v1022_v58 = vadd.f32 %v1018_v47, %v913_v35 }
 0x351   :  { %v1020_v41 = vsel %vm1680_vm5, %v1015_v36, 0.0  ;;  %v1023_v2 = vadd.f32 %v1016_v53, %v916_v59 }
 0x352   :  { %v1024_v52 = vadd.f32 %v1321_v30, %v1020_v41 }
 0x357   :  { %v1333_v37 = vpop.f32.mrf.mxu0 }
 0x358   :  { %v1028_v49 = vrot.slane %v1333_v37, 1 }
 0x359   :  { %v995_v39 = vpop.f32.mrf.mxu0 }
 0x35a   :  { %v1026_v50 = vrot.slane %v995_v39, 1 }
 0x35b   :  { %v1334_v46 = vpop.f32.mrf.mxu0 }
 0x35c   :  { %v1029_v51 = vrot.slane %v1334_v46, 1 }
 0x35d   :  { %v998_v54 = vpop.f32.mrf.mxu0 }
 0x35e   :  { %v1030_v62 = vsel %vm686_vm8, %v1028_v49, %v1029_v51  ;;  %v1033_v56 = vsel %vm686_vm8, %v1029_v51, %v1026_v50  ;;  %v1027_v57 = vrot.slane %v998_v54, 1 }
 0x35f   :  { %v1037_v60 = vsel %vm1696_vm7, %v1033_v56, 0.0  ;;  %v1040_v61 = vadd.f32 %v1030_v62, %v1024_v52 }
 0x360   :  { %v1041_v13 = vadd.f32 %v1037_v60, %v1025_v55  ;;  %v1031_v14 = vsel %vm686_vm8, %v1027_v57, %v1028_v49  ;;  %v1032_v7 = vsel %vm686_vm8, %v1026_v50, %v1027_v57 }
 0x361   :  { %v1035_v9 = vsel %vm1705_vm9, %v1031_v14, 0.0  ;;  %v1038_v15 = vadd.f32 %v1032_v7, %v1022_v58  ;;  %v1051_v8 = vadd.f32 %v1193_v5, %v1040_v61 }
 0x362   :  { %v1039_v18 = vadd.f32 %v1035_v9, %v1023_v2  ;;  %v1052_v19 = vadd.f32 %v1193_v5, %v1041_v13 }
 0x363   :  { %v1049_v21 = vadd.f32 %v1193_v5, %v1038_v15  ;;  %v1055_v22 = vmul.f32 %v1051_v8, %v1602_v11 }
 0x364   :  { %v1050_v23 = vadd.f32 %v1193_v5, %v1039_v18  ;;  %v1056_v48 = vmul.f32 %v1052_v19, %v1604_v12 }
 0x365   :  { %v1053_v26 = vmul.f32 %v1049_v21, %v1600_v10  ;;  %v1059_v44 = vsub.f32 %v1055_v22, %v129_v17 }
 0x366   :  { %v1054_v27 = vmul.f32 %v1050_v23, %v1598_v6  ;;  %v1060_v29 = vsub.f32 %v1056_v48, %v130_v25 }
 0x367   :  { %v1057_v28 = vsub.f32 %v1053_v26, %v127_v20  ;;  %v1063_v31 = vmul.f32 %v1059_v44, %v1059_v44 }
 0x368   :  { %v1058_v0 = vsub.f32 %v1054_v27, %v128_v24  ;;  %v1064_v4 = vmul.f32 %v1060_v29, %v1060_v29 }
 0x369   :  { %v1061_v30 = vmul.f32 %v1057_v28, %v1057_v28  ;;  %v1068_v12 = vsel %vm325_vm1, %v1063_v31, 0.0 }
 0x36a   :  { %v1062_v1 = vmul.f32 %v1058_v0, %v1058_v0  ;;  %v1070_v10 = vsel %vm325_vm1, %v1064_v4, 0.0 }
 0x36b   :  { %v1065_v11 = vsel %vm325_vm1, %v1061_v30, 0.0 }
 0x36c   :  { %v1066_v32 = vsel %vm325_vm1, %v1062_v1, 0.0 }
 0x36d   :  { %v1067_v33 = vadd.f32 %v1066_v32, %v1065_v11 }
 0x36f   :  { %v1069_v3 = vadd.f32 %v1068_v12, %v1067_v33 }
 0x371   :  { %v1071_v34 = vadd.f32 %v1070_v10, %v1069_v3 }
 0x373   :  { %1072 = vadd.xlane.f32.xlu1 %v1071_v34 }
 0x3fc   :  { %v1073_v6 = vpop.xlane.xlu1 %1072 }
 0x3fd   :  { %v1074_v35 = vrot.slane %v1073_v6, 4 }
 0x3ff   :  { %v1075_v36 = vadd.f32 %v1074_v35, %v1073_v6 }
 0x401   :  { %v1076_v37 = vrot.slane %v1075_v36, 2 }
 0x403   :  { %v1077_v38 = vadd.f32 %v1076_v37, %v1075_v36 }
 0x405   :  { %v1078_v39 = vrot.slane %v1077_v38, 1 }
 0x407   :  { %v1079_v40 = vadd.f32 %v1078_v39, %v1077_v38 }
 0x409   :  { %1335 = vpush %v1079_v40 }
 0x43a   :  { %s1336_s4 = spop %1335 }
 0x43b   :  { %v1081_v41 = vstv %s1336_s4 }
 0x43c   :  { %1082 = vst [vmem:[#allocation2] sm:$0xff] %v1081_v41 }
 0x43d   :  { %1407 = shalt.err (!%p1404_p4)
}
 0x43e   :  { %1092 = dma.vmem_to_hbm [thread:$0]  %s1090_s12, 128, %s1797_s8, [#allocation3]  }
 0x43f   :  { %1416 = dma.done.wait [#allocation3], 128  }
 0x440   :  { %1417 = vsyncadd [#allocation3], 4294967168 }
 0x441   :  { %1096 = vsyncpa [#allocation3], 1 }

</bundles_post_ra>
